<compile_context>
chip_gen: v5e
topology: v5e:2x2
jax: 0.10.0
libtpu: 0.0.40
codegen_flags: <defaults>
</compile_context>

<pallas_src>
import jax
import jax.numpy as jnp
from jax.experimental import pallas as pl
from jax.experimental.pallas import tpu as pltpu


D_IN, D_H1, D_H2, D_OUT = 7, 16, 8, 1
GROUP = 8                       # batch elements packed per kernel row (sublane group size)
_LANES = 128
_W2_OFF = GROUP * D_IN          # 56  : rows [0, 56)   of the packed weights = kron(I8, w1)
_W3_OFF = _W2_OFF + _LANES      # 184 : rows [56, 184) = kron(I8, w2) padded to 128 cols
_W_ROWS = _W3_OFF + _LANES      # 312 : rows [184, 312)= kron(I8, w3) padded to 128x128


def _mlp_kernel(x_ref, w_ref, b_ref, o_ref):
    """One batch tile, batch packed 8-per-row onto the lane axis.

    x_ref : (tile_rows, 56)   - 8 batch elements x 7 features per row
    w_ref : (312, 128)        - block-diagonal kron(I8, W1/W2/W3), VMEM-resident
    b_ref : (8, 128)          - row 0: b1 tiled x8, row 1: b2 tiled x8, row 2: b3 tiled x8
    o_ref : (tile_rows, 8)    - 8 batch outputs per row
    """
    hp = jax.lax.Precision.HIGHEST
    x = x_ref[...]                                                     # (tr, 56)

    # Layer 1: (tr, 56) @ (56, 128) -> lane m = 16*j + o holds h1[8r+j, o]
    h1 = jnp.dot(x, w_ref[0:_W2_OFF, :],
                 preferred_element_type=jnp.float32, precision=hp)     # (tr, 128) MXU
    h1 = jnp.maximum(h1 + b_ref[0:1, :], 0.0)                          # bias+ReLU: 2 VPU ops/64 elems

    # Layer 2: (tr, 128) @ (128, 128) -> lanes [0, 64) hold h2, lanes [64, 128) are zero
    h2 = jnp.dot(h1, w_ref[_W2_OFF:_W3_OFF, :],
                 preferred_element_type=jnp.float32, precision=hp)     # (tr, 128) MXU
    h2 = jnp.maximum(h2 + b_ref[1:2, :], 0.0)

    # Layer 3: (tr, 128) @ (128, 128) -> lanes [0, 8) hold the 8 packed outputs
    y = jnp.dot(h2, w_ref[_W3_OFF:_W_ROWS, :],
                preferred_element_type=jnp.float32, precision=hp)      # (tr, 128) MXU
    y = y + b_ref[2:3, :]
    o_ref[...] = y[:, 0:GROUP]                                         # (tr, 8)


def _round_up(n, m):
    return (n + m - 1) // m * m


def _pack_params(params):
    """Build the block-diagonal packed weights (312, 128) and packed biases (8, 128)."""
    w1 = params["w1"].astype(jnp.float32)            # (7, 16)
    w2 = params["w2"].astype(jnp.float32)            # (16, 8)
    w3 = params["w3"].astype(jnp.float32)            # (8, 1)
    b1 = params["b1"].reshape(-1).astype(jnp.float32)
    b2 = params["b2"].reshape(-1).astype(jnp.float32)
    b3 = params["b3"].reshape(-1).astype(jnp.float32)

    eye = jnp.eye(GROUP, dtype=jnp.float32)
    w1_blk = jnp.kron(eye, w1)                                                    # (56, 128)
    w2_blk = jnp.pad(jnp.kron(eye, w2), ((0, 0), (0, _LANES - GROUP * D_H2)))     # (128, 128)
    w3_blk = jnp.pad(jnp.kron(eye, w3),
                     ((0, _LANES - GROUP * D_H2), (0, _LANES - GROUP * D_OUT)))   # (128, 128)
    w_all = jnp.concatenate([w1_blk, w2_blk, w3_blk], axis=0)                     # (312, 128)

    b_all = jnp.zeros((8, _LANES), jnp.float32)
    b_all = b_all.at[0, :].set(jnp.tile(b1, GROUP))
    b_all = b_all.at[1, : GROUP * D_H2].set(jnp.tile(b2, GROUP))
    b_all = b_all.at[2, : GROUP * D_OUT].set(jnp.tile(b3, GROUP))
    return w_all, b_all


@jax.jit
def regression_nn_forward(x, params):
    """Fused MLP forward pass.

    x: (B, 7) float32; params dict with w1(7,16) b1(16,) w2(16,8) b2(8,) w3(8,1) b3(1,)
    (nn.Linear semantics: y = x @ W + b).  Returns (B, 1) float32.
    """
    x = x.astype(jnp.float32)
    B = x.shape[0]
    B_pad = _round_up(B, GROUP)
    if B_pad != B:
        # Only when B % 8 != 0 (single cheap pad); typical batches skip this entirely.
        x = jnp.pad(x, ((0, B_pad - B), (0, 0)))
    rows = B_pad // GROUP
    # Free, layout-preserving view: row r = batch elements [8r, 8r+8) x 7 features, row-major.
    x_packed = x.reshape(rows, GROUP * D_IN)                           # (rows, 56)

    w_all, b_all = _pack_params(params)

    # Tile: up to 4096 packed rows (= 32768 batch elements, ~0.9 MiB x-DMA per grid step).
    # Keep >= 2 grid steps when possible so the "parallel" axis feeds both v7x TensorCores.
    if rows <= GROUP:
        tile_rows = rows                                   # tiny batch: single full-extent block
    else:
        tile_rows = min(4096, _round_up(pl.cdiv(rows, 2), GROUP))
    grid = (pl.cdiv(rows, tile_rows),)

    # Kernel-visible HBM traffic only (there is no extra wrapper pass any more).
    flops = 2 * B_pad * (D_IN * D_H1 + D_H1 * D_H2 + D_H2 * D_OUT)
    bytes_accessed = 4 * (B_pad * D_IN + B_pad * D_OUT + w_all.size + b_all.size)

    out_packed = pl.pallas_call(
        _mlp_kernel,
        out_shape=jax.ShapeDtypeStruct((rows, GROUP * D_OUT), jnp.float32),
        grid=grid,
        in_specs=[
            pl.BlockSpec((tile_rows, GROUP * D_IN), lambda i: (i, 0)),   # x: streamed tiles
            pl.BlockSpec((_W_ROWS, _LANES), lambda i: (0, 0)),           # packed weights: resident
            pl.BlockSpec((8, _LANES), lambda i: (0, 0)),                 # packed biases: resident
        ],
        out_specs=pl.BlockSpec((tile_rows, GROUP * D_OUT), lambda i: (i, 0)),
        compiler_params=pltpu.CompilerParams(
            dimension_semantics=("parallel",),
        ),
        cost_estimate=pl.CostEstimate(
            flops=flops, transcendentals=0, bytes_accessed=bytes_accessed),
    )(x_packed, w_all, b_all)

    # (rows, 8) -> (B_pad, 1) is a free row-major reshape; drop any batch padding.
    return out_packed.reshape(B_pad, D_OUT)[:B]


def init_params(key):
    """Deterministic init matching nn.Linear's default U(-1/sqrt(fan_in), 1/sqrt(fan_in))."""
    def linear(key, fan_in, fan_out):
        kw, kb = jax.random.split(key)
        bound = 1.0 / jnp.sqrt(jnp.float32(fan_in))
        w = jax.random.uniform(kw, (fan_in, fan_out), jnp.float32, -bound, bound)
        b = jax.random.uniform(kb, (fan_out,), jnp.float32, -bound, bound)
        return w, b

    k1, k2, k3 = jax.random.split(key, 3)
    w1, b1 = linear(k1, D_IN, D_H1)
    w2, b2 = linear(k2, D_H1, D_H2)
    w3, b3 = linear(k3, D_H2, D_OUT)
    return {"w1": w1, "b1": b1, "w2": w2, "b2": b2, "w3": w3, "b3": b3}


def _reference_forward(x, p):
    hp = jax.lax.Precision.HIGHEST
    h1 = jnp.maximum(jnp.dot(x, p["w1"], precision=hp) + p["b1"], 0.0)
    h2 = jnp.maximum(jnp.dot(h1, p["w2"], precision=hp) + p["b2"], 0.0)
    return jnp.dot(h2, p["w3"], precision=hp) + p["b3"]


if __name__ == "__main__":
    key = jax.random.PRNGKey(0)
    k_params, k_x = jax.random.split(key)

    params = init_params(k_params)
    x = jax.random.normal(k_x, (8, D_IN), dtype=jnp.float32)   # batch=8, in_features=7

    out = regression_nn_forward(x, params)
    out = jax.block_until_ready(out)

    ref = _reference_forward(x, params)
    assert out.shape == (8, 1), out.shape
    assert jnp.allclose(out, ref, atol=1e-4, rtol=1e-4), "mismatch vs pure-JAX reference"

    print("KERNEL_OK")
</pallas_src>

<mosaic_0001>
module attributes {stable_mosaic.version = 11 : i64} {
  func.func @_mlp_kernel(%arg0: i32, %arg1: memref<1x56xf32, #tpu.memory_space<vmem>>, %arg2: memref<312x128xf32, #tpu.memory_space<vmem>>, %arg3: memref<8x128xf32, #tpu.memory_space<vmem>>, %arg4: memref<1x8xf32, #tpu.memory_space<vmem>>) attributes {dimension_semantics = [#tpu.dimension_semantics<parallel>], iteration_bounds = array<i64: 1>, scalar_prefetch = 0 : i64, scratch_operands = 0 : i64, tpu.core_type = #tpu.core_type<tc>, window_params = [{transform_indices = @transform_0, window_bounds = array<i64: 1, 56>}, {pipeline_mode = #tpu.pipeline_mode<synchronous>, transform_indices = @transform_1, window_bounds = array<i64: 312, 128>}, {pipeline_mode = #tpu.pipeline_mode<synchronous>, transform_indices = @transform_2, window_bounds = array<i64: 8, 128>}, {transform_indices = @transform_3, window_bounds = array<i64: 1, 8>}]} {
    %c0 = arith.constant 0 : index
    %c0_0 = arith.constant 0 : index
    %0 = vector.load %arg1[%c0, %c0_0] : memref<1x56xf32, #tpu.memory_space<vmem>>, vector<1x56xf32>
    %c0_1 = arith.constant 0 : index
    %c0_2 = arith.constant 0 : index
    %1 = vector.load %arg2[%c0_1, %c0_2] : memref<312x128xf32, #tpu.memory_space<vmem>>, vector<56x128xf32>
    %cst = arith.constant dense<0.000000e+00> : vector<1x128xf32>
    %2 = tpu.matmul %0, %1, %cst {dimension_numbers = #tpu.dot_dimension_numbers<[1], [0], [0], [1], [0, 0, 1, 1], [], []>, precision = #tpu.contract_precision<fp32>} : vector<1x56xf32>, vector<56x128xf32>, vector<1x128xf32> -> vector<1x128xf32>
    %c0_3 = arith.constant 0 : index
    %c0_4 = arith.constant 0 : index
    %3 = vector.load %arg3[%c0_3, %c0_4] : memref<8x128xf32, #tpu.memory_space<vmem>>, vector<1x128xf32>
    %4 = arith.addf %2, %3 : vector<1x128xf32>
    %cst_5 = arith.constant 0.000000e+00 : f32
    %5 = vector.broadcast %cst_5 : f32 to vector<1x128xf32>
    %6 = arith.maximumf %4, %5 : vector<1x128xf32>
    %c56 = arith.constant 56 : index
    %c0_6 = arith.constant 0 : index
    %7 = vector.load %arg2[%c56, %c0_6] : memref<312x128xf32, #tpu.memory_space<vmem>>, vector<128x128xf32>
    %cst_7 = arith.constant dense<0.000000e+00> : vector<1x128xf32>
    %8 = tpu.matmul %6, %7, %cst_7 {dimension_numbers = #tpu.dot_dimension_numbers<[1], [0], [0], [1], [0, 0, 1, 1], [], []>, precision = #tpu.contract_precision<fp32>} : vector<1x128xf32>, vector<128x128xf32>, vector<1x128xf32> -> vector<1x128xf32>
    %c1 = arith.constant 1 : index
    %c0_8 = arith.constant 0 : index
    %9 = vector.load %arg3[%c1, %c0_8] : memref<8x128xf32, #tpu.memory_space<vmem>>, vector<1x128xf32>
    %10 = arith.addf %8, %9 : vector<1x128xf32>
    %cst_9 = arith.constant 0.000000e+00 : f32
    %11 = vector.broadcast %cst_9 : f32 to vector<1x128xf32>
    %12 = arith.maximumf %10, %11 : vector<1x128xf32>
    %c184 = arith.constant 184 : index
    %c0_10 = arith.constant 0 : index
    %13 = vector.load %arg2[%c184, %c0_10] : memref<312x128xf32, #tpu.memory_space<vmem>>, vector<128x128xf32>
    %cst_11 = arith.constant dense<0.000000e+00> : vector<1x128xf32>
    %14 = tpu.matmul %12, %13, %cst_11 {dimension_numbers = #tpu.dot_dimension_numbers<[1], [0], [0], [1], [0, 0, 1, 1], [], []>, precision = #tpu.contract_precision<fp32>} : vector<1x128xf32>, vector<128x128xf32>, vector<1x128xf32> -> vector<1x128xf32>
    %c2 = arith.constant 2 : index
    %c0_12 = arith.constant 0 : index
    %15 = vector.load %arg3[%c2, %c0_12] : memref<8x128xf32, #tpu.memory_space<vmem>>, vector<1x128xf32>
    %16 = arith.addf %14, %15 : vector<1x128xf32>
    %17 = vector.extract_strided_slice %16 {offsets = [0, 0], sizes = [1, 8], strides = [1, 1]} : vector<1x128xf32> to vector<1x8xf32>
    %c0_13 = arith.constant 0 : index
    %c0_14 = arith.constant 0 : index
    %18 = vector.load %arg4[%c0_13, %c0_14] : memref<1x8xf32, #tpu.memory_space<vmem>>, vector<1x8xf32>
    tpu.vector_store %arg4[%c0_13, %c0_14], %17 {strides = array<i32>} : memref<1x8xf32, #tpu.memory_space<vmem>>, vector<1x8xf32>,
    return
  }
  func.func @transform_0(%arg0: i32) -> (i32, i32) {
    %c0_i32 = arith.constant 0 : i32
    %c0_i32_0 = arith.constant 0 : i32
    return %arg0, %c0_i32 : i32, i32
  }
  func.func @transform_1(%arg0: i32) -> (i32, i32) {
    %c0_i32 = arith.constant 0 : i32
    %c0_i32_0 = arith.constant 0 : i32
    %c0_i32_1 = arith.constant 0 : i32
    return %c0_i32, %c0_i32_0 : i32, i32
  }
  func.func @transform_2(%arg0: i32) -> (i32, i32) {
    %c0_i32 = arith.constant 0 : i32
    %c0_i32_0 = arith.constant 0 : i32
    %c0_i32_1 = arith.constant 0 : i32
    return %c0_i32, %c0_i32_0 : i32, i32
  }
  func.func @transform_3(%arg0: i32) -> (i32, i32) {
    %c0_i32 = arith.constant 0 : i32
    %c0_i32_0 = arith.constant 0 : i32
    return %arg0, %c0_i32 : i32, i32
  }
}

</mosaic_0001>

<bundles_post_ra>
// kernel: tile.18
= control target key start
LH: loop header
LB: loop body
LE: loop exit
PB: predicated region body
PF: predicated region fallthrough
CT: control target
= control target key end

     0   :  { %s22_s0 = inlined_call_operand.vmem [shape: f32[16], index: 0, kind: input, shape index: {}]   ;;  %s23_s1 = inlined_call_operand.vmem [shape: f32[8,16], index: 1, kind: output, shape index: {}]  }
   0x1   :  { %v4_v0 = vld [vmem:[%s22_s0] ss:$0 sm:$0xff] }
   0x2   :  { %5 = vst [vmem:[%s23_s1] sm:$0xff] %v4_v0 }

// kernel: regression_nn_forward.1
= control target key start
LH: loop header
LB: loop body
LE: loop exit
PB: predicated region body
PF: predicated region fallthrough
CT: control target
= control target key end

     0   :  { %vm24_vm0 = vcmask 457728   ;;  %s1720_s0 = inlined_call_operand.vmem [shape: f32[1,56], index: 0, kind: input, shape index: {}]   ;;  %s1721_s1 = inlined_call_operand.vmem [shape: f32[312,128], index: 1, kind: input, shape index: {}]   ;;  %s1722_s2 = inlined_call_operand.vmem [shape: f32[8,128], index: 2, kind: input, shape index: {}]   ;;  %s1723_s3 = inlined_call_operand.hbm [shape: f32[1,8], index: 3, kind: output, shape index: {}]  }
   0x1   :  { %v22_v0 = vld [vmem:[%s1721_s1 + $0x30] sm:$0xff]  ;;  %v21_v1 = vld [vmem:[%s1721_s1 + $0x28] sm:$0xff]  ;;  %v20_v2 = vld [vmem:[%s1721_s1 + $0x20] sm:$0xff] }
   0x2   :  { %v1045_v3 = vand.u32 4294901760, %v22_v0  ;;  %v1047_v4 = vand.u32 4294901760, %v21_v1  ;;  %v1049_v5 = vand.u32 4294901760, %v20_v2  ;;  %v19_v6 = vld [vmem:[%s1721_s1 + $0x18] sm:$0xff]  ;;  %v18_v7 = vld [vmem:[%s1721_s1 + $0x10] sm:$0xff]  ;;  %v17_v8 = vld [vmem:[%s1721_s1 + $0x8] sm:$0xff] }
   0x3   :  { %v1060_v9 = vand.u32 4294901760, %v19_v6  ;;  %v1062_v10 = vand.u32 4294901760, %v18_v7  ;;  %v1064_v11 = vand.u32 4294901760, %v17_v8  ;;  %v16_v12 = vld [vmem:[%s1721_s1] sm:$0xff] }
   0x4   :  { %v15_v13 = vld [vmem:[%s1720_s0] sm:$0x1]  ;;  %38 = vmatpush.msra.mxu0 %v1045_v3  ;;  %v1074_v14 = vsub.f32 %v22_v0, %v1045_v3  ;;  %v1077_v15 = vsub.f32 %v21_v1, %v1047_v4  ;;  %162 = vmatpush.msra.mxu3 %v1045_v3  ;;  %v1081_v16 = vsub.f32 %v20_v2, %v1049_v5  ;;  %v1083_v17 = vand.u32 4294901760, %v16_v12 }
   0x5   :  { %8 = vsyncpa [#allocation3], 0  ;;  %v1086_v18 = vsub.f32 %v19_v6, %v1060_v9  ;;  %v1089_v19 = vsub.f32 %v18_v7, %v1062_v10  ;;  %v1092_v20 = vsub.f32 %v17_v8, %v1064_v11  ;;  %v26_v21 = vsel %vm24_vm0, %v15_v13, 0  ;;  %v268_v34 = vld [vmem:[%s1721_s1 + $0xb0] sm:$0xff]  ;;  %v267_v35 = vld [vmem:[%s1721_s1 + $0xa8] sm:$0xff]  ;;  %s1015_s13 = smov [#allocation2]  }
   0x6   :  { %40 = vmatpush.msra.mxu0 %v1047_v4  ;;  %v71_v22 = vand.u32 4294901760, %v1074_v14  ;;  %127 = vmatpush.msra.mxu2 %v1074_v14  ;;  %v77_v23 = vand.u32 4294901760, %v1077_v15  ;;  %v83_v24 = vand.u32 4294901760, %v1081_v16  ;;  %v1101_v25 = vsub.f32 %v16_v12, %v1083_v17  ;;  %v266_v36 = vld [vmem:[%s1721_s1 + $0xa0] sm:$0xff]  ;;  %v265_v40 = vld [vmem:[%s1721_s1 + $0x98] sm:$0xff]  ;;  %v264_v41 = vld [vmem:[%s1721_s1 + $0x90] sm:$0xff] }
   0x7   :  { %164 = vmatpush.msra.mxu3 %v1047_v4  ;;  %v89_v26 = vand.u32 4294901760, %v1086_v18  ;;  %v95_v27 = vand.u32 4294901760, %v1089_v19  ;;  %v101_v28 = vand.u32 4294901760, %v1092_v20  ;;  %v1107_v29 = vand.u32 4294901760, %v26_v21  ;;  %v263_v42 = vld [vmem:[%s1721_s1 + $0x88] sm:$0xff]  ;;  %v262_v51 = vld [vmem:[%s1721_s1 + $0x80] sm:$0xff] }
   0x8   :  { %v72_v30 = vsub.f32 %v1074_v14, %v71_v22  ;;  %42 = vmatpush.msra.mxu0 %v1049_v5  ;;  %v78_v31 = vsub.f32 %v1077_v15, %v77_v23  ;;  %130 = vmatpush.msra.mxu2 %v1077_v15  ;;  %v84_v32 = vsub.f32 %v1081_v16, %v83_v24  ;;  %v107_v45 = vand.u32 4294901760, %v1101_v25  ;;  %v261_v0 = vld [vmem:[%s1721_s1 + $0x78] sm:$0xff]  ;;  %s977_s14 = sshll.u32 %s1015_s13, 4  ;;  %s979_s17 = sshll.u32 %s1723_s3, 4  ;;  %s978_s14 = int_to_ptr.vmem [resolvable:$true] %s977_s14  ;;  %s980_s17 = int_to_ptr.hbm [resolvable:$true] %s979_s17 }
   0x9   :  { %166 = vmatpush.msra.mxu3 %v1049_v5  ;;  %v1122_v33 = vsub.f32 %v26_v21, %v1107_v29  ;;  %v90_v39 = vsub.f32 %v1086_v18, %v89_v26  ;;  %v96_v43 = vsub.f32 %v1089_v19, %v95_v27  ;;  %v102_v44 = vsub.f32 %v1092_v20, %v101_v28  ;;  %v260_v21 = vld [vmem:[%s1721_s1 + $0x70] sm:$0xff] }
   0xa   :  { %v73_v37 = vand.u32 4294901760, %v72_v30  ;;  %v79_v38 = vand.u32 4294901760, %v78_v31  ;;  %44 = vmatpush.msra.mxu0 %v1060_v9  ;;  %133 = vmatpush.msra.mxu2 %v1081_v16  ;;  %v85_v47 = vand.u32 4294901760, %v84_v32  ;;  %v1157_v48 = vand.u32 4294901760, %v268_v34 }
   0xb   :  { %168 = vmatpush.msra.mxu3 %v1060_v9  ;;  %v53_v46 = vand.u32 4294901760, %v1122_v33  ;;  %v1159_v49 = vand.u32 4294901760, %v267_v35  ;;  %v1161_v50 = vand.u32 4294901760, %v266_v36  ;;  %v1169_v53 = vand.u32 4294901760, %v265_v40 }
   0xc   :  { %74 = vmatpush.msra.mxu1 %v73_v37  ;;  %46 = vmatpush.msra.mxu0 %v1062_v10  ;;  %v1171_v54 = vand.u32 4294901760, %v264_v41  ;;  %v1173_v55 = vand.u32 4294901760, %v263_v42  ;;  %v91_v56 = vand.u32 4294901760, %v90_v39  ;;  %v1177_v57 = vsub.f32 %v268_v34, %v1157_v48 }
   0xd   :  { %136 = vmatpush.msra.mxu2 %v1086_v18  ;;  %170 = vmatpush.msra.mxu3 %v1062_v10  ;;  %v54_v52 = vsub.f32 %v1122_v33, %v53_v46  ;;  %v1180_v58 = vsub.f32 %v267_v35, %v1159_v49  ;;  %v1183_v59 = vsub.f32 %v266_v36, %v1161_v50  ;;  %v97_v60 = vand.u32 4294901760, %v96_v43  ;;  %v259_v35 = vld [vmem:[%s1721_s1 + $0x68] sm:$0xff] }
   0xe   :  { %80 = vmatpush.msra.mxu1 %v79_v38  ;;  %48 = vmatpush.msra.mxu0 %v1064_v11  ;;  %v108_v61 = vsub.f32 %v1101_v25, %v107_v45  ;;  %v1191_v62 = vsub.f32 %v265_v40, %v1169_v53  ;;  %v1193_v63 = vand.u32 4294901760, %v262_v51  ;;  %v313_v1 = vand.u32 4294901760, %v1177_v57 }
   0xf   :  { %139 = vmatpush.msra.mxu2 %v1089_v19  ;;  %172 = vmatpush.msra.mxu3 %v1064_v11  ;;  %v319_v2 = vand.u32 4294901760, %v1180_v58  ;;  %v325_v6 = vand.u32 4294901760, %v1183_v59  ;;  %v1203_v7 = vsub.f32 %v264_v41, %v1171_v54  ;;  %v103_v8 = vand.u32 4294901760, %v102_v44 }
  0x10   :  { %86 = vmatpush.msra.mxu1 %v85_v47  ;;  %50 = vmatpush.msra.mxu0 %v1083_v17  ;;  %v55_v12 = vand.u32 4294901760, %v54_v52  ;;  %v1209_v13 = vsub.f32 %v263_v42, %v1173_v55  ;;  %v314_v30 = vsub.f32 %v1177_v57, %v313_v1  ;;  %v1222_v31 = vand.u32 4294901760, %v261_v0  ;;  %v256_v47 = vld [vmem:[%s1721_s1 + $0x50] sm:$0xff] }
  0x11   :  { %142 = vmatpush.msra.mxu2 %v1092_v20  ;;  %174 = vmatpush.msra.mxu3 %v1083_v17  ;;  %v320_v14 = vsub.f32 %v1180_v58, %v319_v2  ;;  %v109_v32 = vand.u32 4294901760, %v108_v61  ;;  %v1228_v34 = vsub.f32 %v262_v51, %v1193_v63  ;;  %v326_v37 = vsub.f32 %v1183_v59, %v325_v6 }
  0x12   :  { %194 = vmatpush.msrb.mxu0 %v71_v22  ;;  %92 = vmatpush.msra.mxu1 %v91_v56  ;;  %v331_v22 = vand.u32 4294901760, %v1191_v62  ;;  %v315_v36 = vand.u32 4294901760, %v314_v30  ;;  %v337_v38 = vand.u32 4294901760, %v1203_v7  ;;  %v1238_v39 = vand.u32 4294901760, %v260_v21 }
  0x13   :  { %145 = vmatpush.msra.mxu2 %v1101_v25  ;;  %178 = vmatmul.f32.vlgmr.msra.gmra.mxu3 %v53_v46  ;;  %v343_v15 = vand.u32 4294901760, %v1209_v13  ;;  %v1250_v41 = vsub.f32 %v261_v0, %v1222_v31  ;;  %v1252_v42 = vand.u32 4294901760, %v259_v35  ;;  %v349_v16 = vand.u32 4294901760, %v1228_v34  ;;  %v253_v25 = vld [vmem:[%s1721_s1 + $0x38] sm:$0xff] }
  0x14   :  { %198 = vmatpush.msrb.mxu0 %v77_v23  ;;  %98 = vmatpush.msra.mxu1 %v97_v60  ;;  %v258_v23 = vld [vmem:[%s1721_s1 + $0x60] sm:$0xff]  ;;  %v332_v40 = vsub.f32 %v1191_v62, %v331_v22  ;;  %v327_v43 = vand.u32 4294901760, %v326_v37  ;;  %v338_v44 = vsub.f32 %v1203_v7, %v337_v38  ;;  %v1265_v46 = vsub.f32 %v260_v21, %v1238_v39 }
  0x15   :  { %148 = vmatmul.f32.vlgmr.msra.gmra.mxu2 %v1122_v33  ;;  %56 = vmatmul.f32.vlgmr.msra.gmra.mxu0 %v55_v12  ;;  %v321_v33 = vand.u32 4294901760, %v320_v14  ;;  %v1267_v18 = vand.u32 4294901760, %v258_v23  ;;  %v355_v52 = vand.u32 4294901760, %v1250_v41  ;;  %v1281_v56 = vsub.f32 %v259_v35, %v1252_v42 }
  0x16   :  { %202 = vmatpush.msrb.mxu0 %v83_v24  ;;  %104 = vmatpush.msra.mxu1 %v103_v8  ;;  %v257_v24 = vld [vmem:[%s1721_s1 + $0x58] sm:$0xff]  ;;  %v333_v51 = vand.u32 4294901760, %v332_v40  ;;  %v350_v19 = vsub.f32 %v1228_v34, %v349_v16  ;;  %v339_v60 = vand.u32 4294901760, %v338_v44  ;;  %v361_v61 = vand.u32 4294901760, %v1265_v46 }
  0x17   :  { %316 = vmatpush.msrb.mxu3 %v315_v36  ;;  %271 = vmatpush.msrb.mxu2 %v1157_v48  ;;  %v1297_v0 = vsub.f32 %v258_v23, %v1267_v18  ;;  %v356_v8 = vsub.f32 %v1250_v41, %v355_v52  ;;  %v367_v12 = vand.u32 4294901760, %v1281_v56  ;;  %vm970_vm1 = vcmask 57344  }
  0x18   :  { %206 = vmatpush.msrb.mxu0 %v89_v26  ;;  %110 = vmatpush.msra.mxu1 %v109_v32  ;;  %v344_v26 = vsub.f32 %v1209_v13, %v343_v15  ;;  %v362_v30 = vsub.f32 %v1265_v46, %v361_v61 }
  0x19   :  { %112 = vmatmul.f32.vlgmr.msra.gmra.mxu1 %v1107_v29  ;;  %322 = vmatpush.msrb.mxu3 %v321_v33  ;;  %v373_v14 = vand.u32 4294901760, %v1297_v0  ;;  %v357_v36 = vand.u32 4294901760, %v356_v8  ;;  %v368_v37 = vsub.f32 %v1281_v56, %v367_v12 }
  0x1a   :  { %234 = vmatpush.msrb.mxu1 %v1045_v3  ;;  %210 = vmatpush.msrb.mxu0 %v95_v27  ;;  %v1283_v3 = vand.u32 4294901760, %v257_v24  ;;  %v255_v27 = vld [vmem:[%s1721_s1 + $0x48] sm:$0xff]  ;;  %v345_v20 = vand.u32 4294901760, %v344_v26 }
  0x1b   :  { %328 = vmatpush.msrb.mxu3 %v327_v43  ;;  %273 = vmatpush.msrb.mxu2 %v1159_v49  ;;  %v374_v40 = vsub.f32 %v1297_v0, %v373_v14 }
  0x1c   :  { %236 = vmatpush.msrb.mxu1 %v1047_v4  ;;  %214 = vmatpush.msrb.mxu0 %v101_v28  ;;  %v1299_v4 = vand.u32 4294901760, %v256_v47  ;;  %v254_v28 = vld [vmem:[%s1721_s1 + $0x40] sm:$0xff]  ;;  %v1313_v21 = vsub.f32 %v257_v24, %v1283_v3 }
  0x1d   :  { %334 = vmatpush.msrb.mxu3 %v333_v51  ;;  %275 = vmatpush.msrb.mxu2 %v1161_v50  ;;  %v1330_v35 = vand.u32 4294901760, %v254_v28 }
  0x1e   :  { %238 = vmatpush.msrb.mxu1 %v1049_v5  ;;  %218 = vmatpush.msrb.mxu0 %v107_v45  ;;  %v1315_v5 = vand.u32 4294901760, %v255_v27  ;;  %v351_v45 = vand.u32 4294901760, %v350_v19  ;;  %v1327_v32 = vsub.f32 %v256_v47, %v1299_v4  ;;  %v379_v23 = vand.u32 4294901760, %v1313_v21 }
  0x1f   :  { %220 = vmatmul.f32.vlgmr.msrb.gmra.mxu0 %v1107_v29  ;;  %340 = vmatpush.msrb.mxu3 %v339_v60  ;;  %v1351_v43 = vsub.f32 %v254_v28, %v1330_v35 }
  0x20   :  { %240 = vmatpush.msrb.mxu1 %v1060_v9  ;;  %414 = vmatpush.msra.mxu0 %v1177_v57  ;;  %v1334_v9 = vand.u32 4294901760, %v253_v25  ;;  %v1341_v33 = vsub.f32 %v255_v27, %v1315_v5  ;;  %v385_v24 = vand.u32 4294901760, %v1327_v32  ;;  %v380_v44 = vsub.f32 %v1313_v21, %v379_v23 }
  0x21   :  { %277 = vmatpush.msrb.mxu2 %v1169_v53  ;;  %346 = vmatpush.msrb.mxu3 %v345_v20  ;;  %v397_v51 = vand.u32 4294901760, %v1351_v43 }
  0x22   :  { %242 = vmatpush.msrb.mxu1 %v1062_v10  ;;  %417 = vmatpush.msra.mxu0 %v1180_v58  ;;  %v363_v10 = vand.u32 4294901760, %v362_v30  ;;  %v391_v26 = vand.u32 4294901760, %v1341_v33  ;;  %v1362_v47 = vsub.f32 %v253_v25, %v1334_v9  ;;  %v381_v19 = vand.u32 4294901760, %v380_v44 }
  0x23   :  { %279 = vmatpush.msrb.mxu2 %v1171_v54  ;;  %352 = vmatpush.msrb.mxu3 %v351_v45  ;;  %v398_v28 = vsub.f32 %v1351_v43, %v397_v51 }
  0x24   :  { %244 = vmatpush.msrb.mxu1 %v1064_v11  ;;  %420 = vmatpush.msra.mxu0 %v1183_v59  ;;  %v369_v11 = vand.u32 4294901760, %v368_v37  ;;  %v392_v27 = vsub.f32 %v1341_v33, %v391_v26  ;;  %v403_v60 = vand.u32 4294901760, %v1362_v47  ;;  %v627_v59 = vld [vmem:[%s1721_s1 + $0x130] sm:$0xff] }
  0x25   :  { %281 = vmatpush.msrb.mxu2 %v1173_v55  ;;  %358 = vmatpush.msrb.mxu3 %v357_v36  ;;  %v399_v45 = vand.u32 4294901760, %v398_v28 }
  0x26   :  { %246 = vmatpush.msrb.mxu1 %v1083_v17  ;;  %v375_v17 = vand.u32 4294901760, %v374_v40  ;;  %423 = vmatpush.msra.mxu0 %v1191_v62  ;;  %v393_v8 = vand.u32 4294901760, %v392_v27  ;;  %v404_v25 = vsub.f32 %v1362_v47, %v403_v60  ;;  %v626_v62 = vld [vmem:[%s1721_s1 + $0x128] sm:$0xff] }
  0x27   :  { %248 = vmatmul.f32.vlgmr.msrb.gmra.mxu1 %v1107_v29  ;;  %283 = vmatpush.msrb.mxu2 %v1193_v63  ;;  %v386_v29 = vsub.f32 %v1327_v32, %v385_v24  ;;  %v618_v40 = vld [vmem:[%s1721_s1 + $0xe8] sm:$0xff] }
  0x28   :  { %467 = vmatpush.msra.mxu1 %v1157_v48  ;;  %364 = vmatpush.msrb.mxu3 %v363_v10  ;;  %v405_v30 = vand.u32 4294901760, %v404_v25  ;;  %v619_v10 = vld [vmem:[%s1721_s1 + $0xf0] sm:$0xff] }
  0x29   :  { %285 = vmatpush.msrb.mxu2 %v1222_v31  ;;  %426 = vmatpush.msra.mxu0 %v1203_v7  ;;  %v387_v20 = vand.u32 4294901760, %v386_v29  ;;  %v624_v7 = vld [vmem:[%s1721_s1 + $0x118] sm:$0xff]  ;;  %v1571_v27 = vand.u32 4294901760, %v619_v10 }
  0x2a   :  { %469 = vmatpush.msra.mxu1 %v1159_v49  ;;  %370 = vmatpush.msrb.mxu3 %v369_v11  ;;  %v616_v29 = vld [vmem:[%s1721_s1 + $0xd8] sm:$0xff] }
  0x2b   :  { %287 = vmatpush.msrb.mxu2 %v1238_v39  ;;  %429 = vmatpush.msra.mxu0 %v1209_v13  ;;  %v623_v13 = vld [vmem:[%s1721_s1 + $0x110] sm:$0xff] }
  0x2c   :  { %471 = vmatpush.msra.mxu1 %v1161_v50  ;;  %376 = vmatpush.msrb.mxu3 %v375_v17 }
  0x2d   :  { %289 = vmatpush.msrb.mxu2 %v1252_v42  ;;  %432 = vmatpush.msra.mxu0 %v1228_v34  ;;  %v1492_v34 = vand.u32 4294901760, %v624_v7 }
  0x2e   :  { %473 = vmatpush.msra.mxu1 %v1169_v53  ;;  %382 = vmatpush.msrb.mxu3 %v381_v19 }
  0x2f   :  { %291 = vmatpush.msrb.mxu2 %v1267_v18  ;;  %435 = vmatpush.msra.mxu0 %v1250_v41 }
  0x30   :  { %475 = vmatpush.msra.mxu1 %v1171_v54  ;;  %388 = vmatpush.msrb.mxu3 %v387_v20 }
  0x31   :  { %293 = vmatpush.msrb.mxu2 %v1283_v3  ;;  %438 = vmatpush.msra.mxu0 %v1265_v46 }
  0x32   :  { %477 = vmatpush.msra.mxu1 %v1173_v55  ;;  %394 = vmatpush.msrb.mxu3 %v393_v8 }
  0x33   :  { %295 = vmatpush.msrb.mxu2 %v1299_v4  ;;  %441 = vmatpush.msra.mxu0 %v1281_v56  ;;  %v1517_v56 = vsub.f32 %v624_v7, %v1492_v34 }
  0x34   :  { %479 = vmatpush.msra.mxu1 %v1193_v63  ;;  %400 = vmatpush.msrb.mxu3 %v399_v45  ;;  %v615_v45 = vld [vmem:[%s1721_s1 + $0xd0] sm:$0xff] }
  0x35   :  { %297 = vmatpush.msrb.mxu2 %v1315_v5  ;;  %444 = vmatpush.msra.mxu0 %v1297_v0 }
  0x36   :  { %481 = vmatpush.msra.mxu1 %v1222_v31  ;;  %406 = vmatpush.msrb.mxu3 %v405_v30 }
  0x37   :  { %299 = vmatpush.msrb.mxu2 %v1330_v35  ;;  %447 = vmatpush.msra.mxu0 %v1313_v21 }
  0x38   :  { %575 = vmatpush.msra.mxu3 %v1157_v48  ;;  %483 = vmatpush.msra.mxu1 %v1238_v39  ;;  %v23_v48 = vld [vmem:[%s1722_s2] sm:$0x1] }
  0x39   :  { %301 = vmatpush.msrb.mxu2 %v1334_v9  ;;  %450 = vmatpush.msra.mxu0 %v1327_v32 }
  0x3a   :  { %577 = vmatpush.msra.mxu3 %v1159_v49  ;;  %485 = vmatpush.msra.mxu1 %v1252_v42 }
  0x3b   :  { %508 = vmatpush.msra.mxu2 %v313_v1  ;;  %453 = vmatpush.msra.mxu0 %v1341_v33  ;;  %v1477_v1 = vand.u32 4294901760, %v627_v59 }
  0x3c   :  { %579 = vmatpush.msra.mxu3 %v1161_v50  ;;  %487 = vmatpush.msra.mxu1 %v1267_v18 }
  0x3d   :  { %512 = vmatpush.msra.mxu2 %v319_v2  ;;  %456 = vmatpush.msra.mxu0 %v1351_v43  ;;  %v1479_v2 = vand.u32 4294901760, %v626_v62 }
  0x3e   :  { %581 = vmatpush.msra.mxu3 %v1169_v53  ;;  %489 = vmatpush.msra.mxu1 %v1283_v3 }
  0x3f   :  { %516 = vmatpush.msra.mxu2 %v325_v6  ;;  %459 = vmatpush.msra.mxu0 %v1362_v47 }
  0x40   :  { %583 = vmatpush.msra.mxu3 %v1171_v54  ;;  %491 = vmatpush.msra.mxu1 %v1299_v4 }
  0x41   :  { %520 = vmatpush.msra.mxu2 %v331_v22  ;;  %v622_v22 = vld [vmem:[%s1721_s1 + $0x108] sm:$0xff]  ;;  %630 = vmatpush.msrb.mxu0 %v1477_v1 }
  0x42   :  { %585 = vmatpush.msra.mxu3 %v1173_v55  ;;  %493 = vmatpush.msra.mxu1 %v1315_v5 }
  0x43   :  { %524 = vmatpush.msra.mxu2 %v337_v38  ;;  %v1494_v38 = vand.u32 4294901760, %v623_v13  ;;  %632 = vmatpush.msrb.mxu0 %v1479_v2 }
  0x44   :  { %587 = vmatpush.msra.mxu3 %v1193_v63  ;;  %495 = vmatpush.msra.mxu1 %v1330_v35  ;;  %v625_v63 = vld [vmem:[%s1721_s1 + $0x120] sm:$0xff] }
  0x45   :  { %528 = vmatpush.msra.mxu2 %v343_v15  ;;  %v1481_v6 = vand.u32 4294901760, %v625_v63  ;;  %v621_v15 = vld [vmem:[%s1721_s1 + $0x100] sm:$0xff] }
  0x46   :  { %589 = vmatpush.msra.mxu3 %v1222_v31  ;;  %497 = vmatpush.msra.mxu1 %v1334_v9 }
  0x47   :  { %532 = vmatpush.msra.mxu2 %v349_v16  ;;  %v1505_v16 = vsub.f32 %v626_v62, %v1479_v2  ;;  %v1508_v46 = vsub.f32 %v625_v63, %v1481_v6  ;;  %634 = vmatpush.msrb.mxu0 %v1481_v6 }
  0x48   :  { %591 = vmatpush.msra.mxu3 %v1238_v39  ;;  %v1496_v39 = vand.u32 4294901760, %v622_v22 }
  0x49   :  { %536 = vmatpush.msra.mxu2 %v355_v52  ;;  %v620_v52 = vld [vmem:[%s1721_s1 + $0xf8] sm:$0xff]  ;;  %636 = vmatpush.msrb.mxu0 %v1492_v34 }
  0x4a   :  { %593 = vmatpush.msra.mxu3 %v1252_v42  ;;  %v1502_v42 = vsub.f32 %v627_v59, %v1477_v1  ;;  %v1533_v32 = vand.u32 4294901760, %v620_v52  ;;  %v1601_v59 = vand.u32 4294901760, %v615_v45 }
  0x4b   :  { %540 = vmatpush.msra.mxu2 %v361_v61  ;;  %v1523_v61 = vsub.f32 %v622_v22, %v1496_v39  ;;  %638 = vmatpush.msrb.mxu0 %v1494_v38 }
  0x4c   :  { %595 = vmatpush.msra.mxu3 %v1267_v18  ;;  %v1511_v18 = vand.u32 4294901760, %v621_v15  ;;  %v672_v0 = vand.u32 4294901760, %v1502_v42  ;;  %v1558_v44 = vsub.f32 %v620_v52, %v1533_v32 }
  0x4d   :  { %544 = vmatpush.msra.mxu2 %v367_v12  ;;  %v684_v12 = vand.u32 4294901760, %v1508_v46  ;;  %v702_v33 = vand.u32 4294901760, %v1523_v61  ;;  %640 = vmatpush.msrb.mxu0 %v1496_v39 }
  0x4e   :  { %597 = vmatpush.msra.mxu3 %v1283_v3  ;;  %v1520_v3 = vsub.f32 %v623_v13, %v1494_v38  ;;  %v714_v30 = vand.u32 4294901760, %v1558_v44 }
  0x4f   :  { %548 = vmatpush.msra.mxu2 %v373_v14  ;;  %v1531_v14 = vsub.f32 %v621_v15, %v1511_v18  ;;  %v685_v36 = vsub.f32 %v1508_v46, %v684_v12  ;;  %v703_v8 = vsub.f32 %v1523_v61, %v702_v33  ;;  %642 = vmatpush.msrb.mxu0 %v1511_v18 }
  0x50   :  { %599 = vmatpush.msra.mxu3 %v1299_v4  ;;  %v678_v4 = vand.u32 4294901760, %v1505_v16  ;;  %v696_v37 = vand.u32 4294901760, %v1520_v3  ;;  %v715_v7 = vsub.f32 %v1558_v44, %v714_v30 }
  0x51   :  { %552 = vmatpush.msra.mxu2 %v379_v23  ;;  %v708_v17 = vand.u32 4294901760, %v1531_v14  ;;  %v704_v63 = vand.u32 4294901760, %v703_v8  ;;  %644 = vmatpush.msrb.mxu0 %v1533_v32  ;;  %v613_v8 = vld [vmem:[%s1721_s1 + $0xc0] sm:$0xff] }
  0x52   :  { %601 = vmatpush.msra.mxu3 %v1315_v5  ;;  %v690_v5 = vand.u32 4294901760, %v1517_v56  ;;  %v697_v19 = vsub.f32 %v1520_v3, %v696_v37 }
  0x53   :  { %556 = vmatpush.msra.mxu2 %v385_v24  ;;  %646 = vmatpush.msrb.mxu0 %v1571_v27 }
  0x54   :  { %603 = vmatpush.msra.mxu3 %v1330_v35  ;;  %v673_v35 = vsub.f32 %v1502_v42, %v672_v0  ;;  %v691_v23 = vsub.f32 %v1517_v56, %v690_v5 }
  0x55   :  { %560 = vmatpush.msra.mxu2 %v391_v26  ;;  %v617_v26 = vld [vmem:[%s1721_s1 + $0xe0] sm:$0xff] }
  0x56   :  { %605 = vmatpush.msra.mxu3 %v1334_v9  ;;  %v679_v9 = vsub.f32 %v1505_v16, %v678_v4  ;;  %v674_v43 = vand.u32 4294901760, %v673_v35  ;;  %v692_v28 = vand.u32 4294901760, %v691_v23  ;;  %v1578_v25 = vand.u32 4294901760, %v617_v26 }
  0x57   :  { %564 = vmatpush.msra.mxu2 %v397_v51  ;;  %v686_v51 = vand.u32 4294901760, %v685_v36 }
  0x58   :  { %v680_v11 = vand.u32 4294901760, %v679_v9  ;;  %675 = vmatpush.msrb.mxu1 %v674_v43  ;;  %v716_v9 = vand.u32 4294901760, %v715_v7 }
  0x59   :  { %568 = vmatpush.msra.mxu2 %v403_v60  ;;  %v1573_v60 = vand.u32 4294901760, %v618_v40 }
  0x5a   :  { %681 = vmatpush.msrb.mxu1 %v680_v11 }
  0x5b   :  { %648 = vmatpush.msrb.mxu0 %v1573_v60 }
  0x5c   :  { %687 = vmatpush.msrb.mxu1 %v686_v51 }
  0x5d   :  { %650 = vmatpush.msrb.mxu0 %v1578_v25 }
  0x5e   :  { %693 = vmatpush.msrb.mxu1 %v692_v28 }
  0x92   :  { %v57_v49 = vpop.f32.mrf.mxu0 }
  0x93   :  { %v58_v50 = vadd.f32 %v57_v49, %v23_v48  ;;  %v1585_v48 = vsub.f32 %v619_v10, %v1571_v27  ;;  %v1589_v49 = vsub.f32 %v618_v40, %v1573_v60 }
  0x95   :  { %v726_v13 = vand.u32 4294901760, %v1589_v49 }
  0x96   :  { %v113_v53 = vpop.f32.mrf.mxu1  ;;  %v179_v57 = vpop.f32.mrf.mxu3 }
  0x97   :  { %v114_v55 = vadd.f32 %v113_v53, %v58_v50  ;;  %v1591_v50 = vand.u32 4294901760, %v616_v29  ;;  %v727_v36 = vsub.f32 %v1589_v49, %v726_v13 }
  0x98   :  { %v149_v54 = vpop.f32.mrf.mxu2 }
  0x99   :  { %v150_v58 = vadd.f32 %v149_v54, %v114_v55  ;;  %v709_v54 = vsub.f32 %v1531_v14, %v708_v17  ;;  %v698_v55 = vand.u32 4294901760, %v697_v19  ;;  %v1609_v22 = vsub.f32 %v616_v29, %v1591_v50  ;;  %652 = vmatpush.msrb.mxu0 %v1591_v50 }
  0x9a   :  { %v728_v11 = vand.u32 4294901760, %v727_v36 }
  0x9b   :  { %v180_v31 = vadd.f32 %v179_v57, %v150_v58  ;;  %v720_v57 = vand.u32 4294901760, %v1585_v48  ;;  %v1599_v58 = vsub.f32 %v617_v26, %v1578_v25  ;;  %699 = vmatpush.msrb.mxu1 %v698_v55  ;;  %v710_v15 = vand.u32 4294901760, %v709_v54  ;;  %654 = vmatpush.msrb.mxu0 %v1601_v59  ;;  %v612_v54 = vld [vmem:[%s1721_s1 + $0xb8] sm:$0xff] }
  0x9c   :  { %v221_v41 = vpop.f32.mrf.mxu0  ;;  %v738_v23 = vand.u32 4294901760, %v1609_v22 }
  0x9d   :  { %v222_v21 = vadd.f32 %v221_v41, %v180_v31  ;;  %v721_v41 = vsub.f32 %v1585_v48, %v720_v57  ;;  %v732_v52 = vand.u32 4294901760, %v1599_v58  ;;  %705 = vmatpush.msrb.mxu1 %v704_v63  ;;  %v659_v63 = vand.u32 4294901760, %v612_v54 }
  0x9e   :  { %v739_v26 = vsub.f32 %v1609_v22, %v738_v23 }
  0x9f   :  { %711 = vmatpush.msrb.mxu1 %v710_v15  ;;  %v722_v40 = vand.u32 4294901760, %v721_v41  ;;  %v761_v15 = vsub.f32 %v612_v54, %v659_v63 }
  0xa0   :  { %v740_v51 = vand.u32 4294901760, %v739_v26 }
  0xa1   :  { %717 = vmatpush.msrb.mxu1 %v716_v9  ;;  %v762_v9 = vand.u32 4294901760, %v761_v15 }
  0xa3   :  { %723 = vmatpush.msrb.mxu1 %v722_v40 }
  0xa4   :  { %v249_v24 = vpop.f32.mrf.mxu1 }
  0xa5   :  { %v250_v47 = vadd.f32 %v249_v24, %v222_v21  ;;  %v1618_v21 = vsub.f32 %v615_v45, %v1601_v59  ;;  %v733_v24 = vsub.f32 %v1599_v58, %v732_v52  ;;  %729 = vmatpush.msrb.mxu1 %v728_v11 }
  0xa7   :  { %v252_v20 = vmax.f32 %v250_v47, 0.0  ;;  %v744_v43 = vand.u32 4294901760, %v1618_v21  ;;  %v734_v47 = vand.u32 4294901760, %v733_v24 }
  0xa9   :  { %v302_v53 = vand.u32 4294901760, %v252_v20  ;;  %v745_v29 = vsub.f32 %v1618_v21, %v744_v43  ;;  %735 = vmatpush.msrb.mxu1 %v734_v47 }
  0xab   :  { %v303_v62 = vsub.f32 %v252_v20, %v302_v53  ;;  %408 = vmatmul.f32.vlgmr.msrb.gmra.mxu3 %v302_v53  ;;  %v746_v19 = vand.u32 4294901760, %v745_v29  ;;  %741 = vmatpush.msrb.mxu1 %v740_v51  ;;  %v614_v20 = vld [vmem:[%s1721_s1 + $0xc8] sm:$0xff] }
  0xac   :  { %826 = vmatpush.msrb.mxu3 %v1477_v1  ;;  %v655_v28 = vand.u32 4294901760, %v614_v20 }
  0xad   :  { %462 = vmatmul.f32.vlgmr.msra.gmra.mxu0 %v303_v62  ;;  %v304_v31 = vand.u32 4294901760, %v303_v62  ;;  %747 = vmatpush.msrb.mxu1 %v746_v19 }
  0xae   :  { %828 = vmatpush.msrb.mxu3 %v1479_v2  ;;  %v749_v45 = vsub.f32 %v614_v20, %v655_v28  ;;  %656 = vmatpush.msrb.mxu0 %v655_v28 }
  0xaf   :  { %501 = vmatmul.f32.vlgmr.msra.gmra.mxu1 %v304_v31  ;;  %v305_v35 = vsub.f32 %v303_v62, %v304_v31 }
  0xb0   :  { %830 = vmatpush.msrb.mxu3 %v1481_v6  ;;  %v750_v55 = vand.u32 4294901760, %v749_v45 }
  0xb1   :  { %v306_v10 = vand.u32 4294901760, %v305_v35 }
  0xb2   :  { %832 = vmatpush.msrb.mxu3 %v1492_v34  ;;  %v751_v7 = vsub.f32 %v749_v45, %v750_v55 }
  0xb3   :  { %307 = vmatmul.f32.vlgmr.msrb.gmra.mxu2 %v306_v10  ;;  %607 = vmatmul.f32.vlgmr.msra.gmra.mxu3 %v302_v53  ;;  %v763_v10 = vsub.f32 %v761_v15, %v762_v9 }
  0xb4   :  { %773 = vmatpush.msrb.mxu2 %v1502_v42  ;;  %834 = vmatpush.msrb.mxu3 %v1494_v38  ;;  %v752_v41 = vand.u32 4294901760, %v751_v7 }
  0xb5   :  { %v764_v40 = vand.u32 4294901760, %v763_v10 }
  0xb6   :  { %776 = vmatpush.msrb.mxu2 %v1505_v16  ;;  %836 = vmatpush.msrb.mxu3 %v1496_v39 }
  0xb7   :  { %753 = vmatpush.msrb.mxu1 %v752_v41 }
  0xb8   :  { %779 = vmatpush.msrb.mxu2 %v1508_v46  ;;  %838 = vmatpush.msrb.mxu3 %v1511_v18 }
  0xba   :  { %782 = vmatpush.msrb.mxu2 %v1517_v56  ;;  %840 = vmatpush.msrb.mxu3 %v1533_v32 }
  0xbb   :  { %570 = vmatmul.f32.vlgmr.msra.gmra.mxu2 %v302_v53  ;;  %v657_v53 = vand.u32 4294901760, %v613_v8 }
  0xbc   :  { %785 = vmatpush.msrb.mxu2 %v1520_v3  ;;  %842 = vmatpush.msrb.mxu3 %v1571_v27 }
  0xbd   :  { %v755_v62 = vsub.f32 %v613_v8, %v657_v53  ;;  %658 = vmatpush.msrb.mxu0 %v657_v53 }
  0xbe   :  { %788 = vmatpush.msrb.mxu2 %v1523_v61  ;;  %844 = vmatpush.msrb.mxu3 %v1573_v60 }
  0xbf   :  { %v756_v31 = vand.u32 4294901760, %v755_v62  ;;  %660 = vmatpush.msrb.mxu0 %v659_v63 }
  0xc0   :  { %791 = vmatpush.msrb.mxu2 %v1531_v14  ;;  %846 = vmatpush.msrb.mxu3 %v1578_v25 }
  0xc1   :  { %867 = vmatpush.msra.mxu0 %v672_v0  ;;  %v757_v35 = vsub.f32 %v755_v62, %v756_v31 }
  0xc2   :  { %794 = vmatpush.msrb.mxu2 %v1558_v44  ;;  %848 = vmatpush.msrb.mxu3 %v1591_v50 }
  0xc3   :  { %871 = vmatpush.msra.mxu0 %v678_v4  ;;  %v758_v36 = vand.u32 4294901760, %v757_v35 }
  0xc4   :  { %797 = vmatpush.msrb.mxu2 %v1585_v48  ;;  %850 = vmatpush.msrb.mxu3 %v1601_v59 }
  0xc5   :  { %875 = vmatpush.msra.mxu0 %v684_v12  ;;  %759 = vmatpush.msrb.mxu1 %v758_v36 }
  0xc6   :  { %800 = vmatpush.msrb.mxu2 %v1589_v49  ;;  %852 = vmatpush.msrb.mxu3 %v655_v28 }
  0xc7   :  { %879 = vmatpush.msra.mxu0 %v690_v5  ;;  %765 = vmatpush.msrb.mxu1 %v764_v40 }
  0xc8   :  { %803 = vmatpush.msrb.mxu2 %v1599_v58  ;;  %854 = vmatpush.msrb.mxu3 %v657_v53 }
  0xc9   :  { %934 = vmatpush.msra.mxu1 %v1477_v1  ;;  %883 = vmatpush.msra.mxu0 %v696_v37  ;;  %v269_v1 = vld [vmem:[%s1722_s2 + $0x1] sm:$0x1]  ;;  %v628_v37 = vld [vmem:[%s1722_s2 + $0x2] sm:$0x1] }
  0xca   :  { %806 = vmatpush.msrb.mxu2 %v1609_v22  ;;  %856 = vmatpush.msrb.mxu3 %v659_v63 }
  0xcb   :  { %936 = vmatpush.msra.mxu1 %v1479_v2  ;;  %887 = vmatpush.msra.mxu0 %v702_v33 }
  0xcc   :  { %809 = vmatpush.msrb.mxu2 %v1618_v21 }
  0xcd   :  { %938 = vmatpush.msra.mxu1 %v1481_v6  ;;  %891 = vmatpush.msra.mxu0 %v708_v17 }
  0xce   :  { %812 = vmatpush.msrb.mxu2 %v749_v45 }
  0xcf   :  { %940 = vmatpush.msra.mxu1 %v1492_v34  ;;  %895 = vmatpush.msra.mxu0 %v714_v30 }
  0xd0   :  { %815 = vmatpush.msrb.mxu2 %v755_v62 }
  0xd1   :  { %942 = vmatpush.msra.mxu1 %v1494_v38  ;;  %899 = vmatpush.msra.mxu0 %v720_v57 }
  0xd2   :  { %818 = vmatpush.msrb.mxu2 %v761_v15 }
  0xd3   :  { %944 = vmatpush.msra.mxu1 %v1496_v39  ;;  %903 = vmatpush.msra.mxu0 %v726_v13 }
  0xd5   :  { %946 = vmatpush.msra.mxu1 %v1511_v18  ;;  %907 = vmatpush.msra.mxu0 %v732_v52 }
  0xd7   :  { %948 = vmatpush.msra.mxu1 %v1533_v32  ;;  %911 = vmatpush.msra.mxu0 %v738_v23 }
  0xd9   :  { %950 = vmatpush.msra.mxu1 %v1571_v27  ;;  %915 = vmatpush.msra.mxu0 %v744_v43 }
  0xdb   :  { %952 = vmatpush.msra.mxu1 %v1573_v60  ;;  %919 = vmatpush.msra.mxu0 %v750_v55 }
  0xdd   :  { %954 = vmatpush.msra.mxu1 %v1578_v25  ;;  %923 = vmatpush.msra.mxu0 %v756_v31 }
  0xdf   :  { %956 = vmatpush.msra.mxu1 %v1591_v50  ;;  %927 = vmatpush.msra.mxu0 %v762_v9 }
  0xe1   :  { %958 = vmatpush.msra.mxu1 %v1601_v59 }
  0xe3   :  { %960 = vmatpush.msra.mxu1 %v655_v28 }
  0xe5   :  { %962 = vmatpush.msra.mxu1 %v657_v53 }
  0xe7   :  { %964 = vmatpush.msra.mxu1 %v659_v63 }
 0x12a   :  { %v463_v39 = vpop.f32.mrf.mxu0 }
 0x12c   :  { %v502_v16 = vpop.f32.mrf.mxu1 }
 0x12e   :  { %v409_v2 = vpop.f32.mrf.mxu3 }
 0x136   :  { %v308_v6 = vpop.f32.mrf.mxu2  ;;  %v608_v3 = vpop.f32.mrf.mxu3 }
 0x137   :  { %v309_v34 = vadd.f32 %v308_v6, %v269_v1 }
 0x139   :  { %v410_v38 = vadd.f32 %v409_v2, %v309_v34 }
 0x13b   :  { %v464_v42 = vadd.f32 %v463_v39, %v410_v38 }
 0x13d   :  { %v503_v46 = vadd.f32 %v502_v16, %v464_v42 }
 0x13e   :  { %v571_v18 = vpop.f32.mrf.mxu2 }
 0x13f   :  { %v572_v56 = vadd.f32 %v571_v18, %v503_v46 }
 0x141   :  { %v609_v61 = vadd.f32 %v608_v3, %v572_v56 }
 0x143   :  { %v611_v0 = vmax.f32 %v609_v61, 0.0 }
 0x145   :  { %v661_v4 = vand.u32 4294901760, %v611_v0 }
 0x147   :  { %v662_v12 = vsub.f32 %v611_v0, %v661_v4  ;;  %767 = vmatmul.f32.vlgmr.msrb.gmra.mxu1 %v661_v4 }
 0x149   :  { %821 = vmatmul.f32.vlgmr.msrb.gmra.mxu2 %v662_v12  ;;  %v663_v5 = vand.u32 4294901760, %v662_v12 }
 0x14b   :  { %860 = vmatmul.f32.vlgmr.msrb.gmra.mxu3 %v663_v5  ;;  %v664_v14 = vsub.f32 %v662_v12, %v663_v5 }
 0x14d   :  { %v665_v32 = vand.u32 4294901760, %v664_v14 }
 0x14f   :  { %666 = vmatmul.f32.vlgmr.msrb.gmra.mxu0 %v665_v32  ;;  %966 = vmatmul.f32.vlgmr.msra.gmra.mxu1 %v661_v4 }
 0x157   :  { %929 = vmatmul.f32.vlgmr.msra.gmra.mxu0 %v661_v4 }
 0x1c4   :  { %v768_v33 = vpop.f32.mrf.mxu1 }
 0x1cc   :  { %v667_v44 = vpop.f32.mrf.mxu0  ;;  %v822_v60 = vpop.f32.mrf.mxu2 }
 0x1cd   :  { %v668_v17 = vadd.f32 %v667_v44, %v628_v37  ;;  %v967_v57 = vpop.f32.mrf.mxu1 }
 0x1ce   :  { %v861_v30 = vpop.f32.mrf.mxu3 }
 0x1cf   :  { %v769_v27 = vadd.f32 %v768_v33, %v668_v17 }
 0x1d1   :  { %v823_v25 = vadd.f32 %v822_v60, %v769_v27 }
 0x1d3   :  { %v862_v48 = vadd.f32 %v861_v30, %v823_v25 }
 0x1d4   :  { %v930_v49 = vpop.f32.mrf.mxu0 }
 0x1d5   :  { %v931_v50 = vadd.f32 %v930_v49, %v862_v48 }
 0x1d7   :  { %v968_v58 = vadd.f32 %v967_v57, %v931_v50 }
 0x1d9   :  { %971 = vst.msk [vmem:[#allocation2] sm:$0x1] %vm970_vm1, %v968_v58 }
 0x1da   :  { %982 = dma.vmem_to_hbm [thread:$0]  %s978_s14, 16, %s980_s17, [#allocation3]  }
 0x1db   :  { %1013 = dma.done.wait [#allocation3], 16  }
 0x1dc   :  { %1014 = vsyncadd [#allocation3], 4294967280 }
 0x1dd   :  { %987 = vsyncpa [#allocation3], 1 }

</bundles_post_ra>
